<compile_context>
chip_gen: v7x
topology: tpu7x:2x2x1
jax: 0.10.0
libtpu: 0.0.40
codegen_flags: <defaults>
</compile_context>

<pallas_src>
import jax
import jax.numpy as jnp
from jax.experimental import pallas as pl
from jax.experimental.pallas import tpu as pltpu


def _round_up(a: int, b: int) -> int:
    return (a + b - 1) // b * b


def _largest_dividing_tile(size_pad: int, max_tile: int, unit: int = 128) -> int:
    """Largest multiple of `unit` that divides `size_pad` and is <= max_tile.

    `size_pad` must already be a multiple of `unit`.  Always >= `unit`.
    """
    k = size_pad // unit
    max_units = max(1, max_tile // unit)
    best = 1
    d = 1
    while d * d <= k:
        if k % d == 0:
            for cand in (d, k // d):
                if cand <= max_units and cand > best:
                    best = cand
        d += 1
    return best * unit


def _matmul_kernel(x_ref, a_ref, o_ref):
    # x_ref: (tm, tk) bf16   batch-of-images tile
    # a_ref: (tk, tn) bf16   transposed system-matrix tile
    # o_ref: (tm, tn) f32    projections tile (VMEM-resident across the k axis)
    @pl.when(pl.program_id(2) == 0)
    def _init():
        o_ref[...] = jnp.zeros_like(o_ref)

    o_ref[...] += jnp.dot(
        x_ref[...], a_ref[...], preferred_element_type=jnp.float32
    )


class LinearOperatorModule:
    """Pallas analogue of `op` / odl_torch.OperatorModule for a linear forward_op.

    The operator matrix is cast to bf16 and zero-padded to its streaming layout
    once at construction time (hoisted out of the per-forward hot path).
    """

    def __init__(self, a, range_shape, *, max_tile: int = 2048):
        # a: (M, N) float32 system matrix mapping domain (size N) -> range (size M).
        M, N = a.shape
        self.range_shape = tuple(range_shape)
        self.N = N
        self.M = M
        self.max_tile = int(max_tile)

        # Pad only to 128-lane multiples (no tile-multiple over-padding).
        self.N_pad = _round_up(N, 128)
        self.M_pad = _round_up(M, 128)

        # Reduction tile: largest 128-multiple dividing N_pad, capped at max_tile.
        self.tk = _largest_dividing_tile(self.N_pad, self.max_tile)

        # Prepared (padded, bf16) transposed operator: (N_pad, M_pad).
        a_t = jnp.asarray(a).T.astype(jnp.bfloat16)
        self.a_prepared = (
            jnp.zeros((self.N_pad, self.M_pad), jnp.bfloat16).at[:N, :M].set(a_t)
        )

    def __call__(self, x):
        return self.forward(x)

    def forward(self, x):
        """x: (B, H, W) float32 with H*W == N.  Returns (B,) + range_shape, f32."""
        B = x.shape[0]
        N, M = self.N, self.M
        N_pad, M_pad, tk = self.N_pad, self.M_pad, self.tk

        # Batch tile: bf16 sublane multiple (16), cover the whole (small) batch
        # so A is streamed exactly once; cap at 256 for larger batches.
        tm = min(_round_up(B, 16), 256)
        B_pad = _round_up(B, tm)
        n_batch_tiles = B_pad // tm

        # Output-column tile: largest 128-multiple dividing M_pad, capped at
        # max_tile.  If the batch axis has a single block, keep >= 2 j blocks so
        # both v7x TensorCores get work.
        max_tn = self.max_tile
        if n_batch_tiles == 1 and M_pad >= 256:
            max_tn = min(max_tn, M_pad // 2)
        tn = _largest_dividing_tile(M_pad, max_tn)

        # Pad x (per call; the operator matrix is already prepared).
        x_flat = x.reshape(B, N).astype(jnp.bfloat16)
        x_p = jnp.zeros((B_pad, N_pad), jnp.bfloat16).at[:B, :N].set(x_flat)

        grid = (B_pad // tm, M_pad // tn, N_pad // tk)

        cost = pl.CostEstimate(
            flops=2 * B_pad * N_pad * M_pad,
            transcendentals=0,
            bytes_accessed=(
                x_p.size * 2
                + self.a_prepared.size * 2 * n_batch_tiles  # A re-streamed per batch tile
                + B_pad * M_pad * 4
            ),
        )

        # VMEM budget from the actual tile sizes (double-buffered inputs/outputs),
        # plus headroom; capped at 48 MiB so it's legal on v7x (64 MiB physical).
        tile_bytes = 2 * (tm * tk * 2) + 2 * (tk * tn * 2) + 2 * (tm * tn * 4)
        vmem_limit = min(max(tile_bytes + (4 << 20), 16 << 20), 48 << 20)

        y_p = pl.pallas_call(
            _matmul_kernel,
            out_shape=jax.ShapeDtypeStruct((B_pad, M_pad), jnp.float32),
            grid=grid,
            in_specs=[
                pl.BlockSpec((tm, tk), lambda i, j, k: (i, k)),
                pl.BlockSpec((tk, tn), lambda i, j, k: (k, j)),
            ],
            out_specs=pl.BlockSpec((tm, tn), lambda i, j, k: (i, j)),
            compiler_params=pltpu.CompilerParams(
                dimension_semantics=("parallel", "parallel", "arbitrary"),
                vmem_limit_bytes=vmem_limit,
            ),
            cost_estimate=cost,
        )(x_p, self.a_prepared)

        # Strip padding and reshape to the operator's range shape.
        return y_p[:B, :M].reshape((B,) + self.range_shape)


if __name__ == "__main__":
    # Small shapes: batch=2, image 16x16, range = 8 angles x 24 detector bins.
    B, H, W = 2, 16, 16
    P, D = 8, 24
    N, M = H * W, P * D

    key = jax.random.PRNGKey(0)
    k_x, k_a = jax.random.split(key)

    x = jax.random.normal(k_x, (B, H, W), dtype=jnp.float32)
    # Deterministic synthesized system matrix (stands in for the ODL forward_op).
    a = jax.random.normal(k_a, (M, N), dtype=jnp.float32) / jnp.sqrt(N)

    module = LinearOperatorModule(a, (P, D))
    y = module(x)
    jax.block_until_ready(y)

    # Reference at the same (bf16-operand, f32-accumulate) precision.
    x_bf = x.reshape(B, N).astype(jnp.bfloat16).astype(jnp.float32)
    a_bf = a.T.astype(jnp.bfloat16).astype(jnp.float32)
    y_ref = (x_bf @ a_bf).reshape(B, P, D)

    assert y.shape == (B, P, D)
    assert jnp.allclose(y, y_ref, atol=1e-2, rtol=1e-2)

    print("KERNEL_OK")
</pallas_src>

<mosaic_0001>
module attributes {stable_mosaic.version = 11 : i64} {
  func.func @_matmul_kernel(%arg0: i32, %arg1: i32, %arg2: i32, %arg3: memref<16x256xbf16, #tpu.memory_space<vmem>>, %arg4: memref<256x128xbf16, #tpu.memory_space<vmem>>, %arg5: memref<16x128xf32, #tpu.memory_space<vmem>>) attributes {dimension_semantics = [#tpu.dimension_semantics<parallel>, #tpu.dimension_semantics<parallel>, #tpu.dimension_semantics<arbitrary>], iteration_bounds = array<i64: 1, 2, 1>, scalar_prefetch = 0 : i64, scratch_operands = 0 : i64, tpu.core_type = #tpu.core_type<tc>, window_params = [{transform_indices = @transform_0, window_bounds = array<i64: 16, 256>}, {transform_indices = @transform_1, window_bounds = array<i64: 256, 128>}, {transform_indices = @transform_2, window_bounds = array<i64: 16, 128>}]} {
    %c0_i32 = arith.constant 0 : i32
    %0 = arith.cmpi eq, %arg2, %c0_i32 : i32
    %1 = arith.extui %0 : i1 to i32
    %c0_i32_0 = arith.constant 0 : i32
    %2 = arith.cmpi ne, %1, %c0_i32_0 : i32
    scf.if %2 {
      %cst_8 = arith.constant 0.000000e+00 : f32
      %9 = vector.broadcast %cst_8 : f32 to vector<16x128xf32>
      %c0_9 = arith.constant 0 : index
      %c0_10 = arith.constant 0 : index
      %10 = vector.load %arg5[%c0_9, %c0_10] : memref<16x128xf32, #tpu.memory_space<vmem>>, vector<16x128xf32>
      tpu.vector_store %arg5[%c0_9, %c0_10], %9 {strides = array<i32>} : memref<16x128xf32, #tpu.memory_space<vmem>>, vector<16x128xf32>,
    } else {
    }
    %c0 = arith.constant 0 : index
    %c0_1 = arith.constant 0 : index
    %3 = vector.load %arg5[%c0, %c0_1] : memref<16x128xf32, #tpu.memory_space<vmem>>, vector<16x128xf32>
    %c0_2 = arith.constant 0 : index
    %c0_3 = arith.constant 0 : index
    %4 = vector.load %arg3[%c0_2, %c0_3] : memref<16x256xbf16, #tpu.memory_space<vmem>>, vector<16x256xbf16>
    %c0_4 = arith.constant 0 : index
    %c0_5 = arith.constant 0 : index
    %5 = vector.load %arg4[%c0_4, %c0_5] : memref<256x128xbf16, #tpu.memory_space<vmem>>, vector<256x128xbf16>
    %cst = arith.constant dense<0.000000e+00> : vector<16x128xf32>
    %6 = tpu.matmul %4, %5, %cst {dimension_numbers = #tpu.dot_dimension_numbers<[1], [0], [0], [1], [0, 0, 1, 1], [], []>} : vector<16x256xbf16>, vector<256x128xbf16>, vector<16x128xf32> -> vector<16x128xf32>
    %7 = arith.addf %3, %6 : vector<16x128xf32>
    %c0_6 = arith.constant 0 : index
    %c0_7 = arith.constant 0 : index
    %8 = vector.load %arg5[%c0_6, %c0_7] : memref<16x128xf32, #tpu.memory_space<vmem>>, vector<16x128xf32>
    tpu.vector_store %arg5[%c0_6, %c0_7], %7 {strides = array<i32>} : memref<16x128xf32, #tpu.memory_space<vmem>>, vector<16x128xf32>,
    return
  }
  func.func @transform_0(%arg0: i32, %arg1: i32, %arg2: i32) -> (i32, i32) {
    %c0_i32 = arith.constant 0 : i32
    return %arg0, %arg2 : i32, i32
  }
  func.func @transform_1(%arg0: i32, %arg1: i32, %arg2: i32) -> (i32, i32) {
    %c0_i32 = arith.constant 0 : i32
    return %arg2, %arg1 : i32, i32
  }
  func.func @transform_2(%arg0: i32, %arg1: i32, %arg2: i32) -> (i32, i32) {
    %c0_i32 = arith.constant 0 : i32
    return %arg0, %arg1 : i32, i32
  }
}

</mosaic_0001>

<bundles_post_ra>
// kernel: tpu_custom_call.1
= control target key start
LH: loop header
LB: loop body
LE: loop exit
PB: predicated region body
PF: predicated region fallthrough
CT: control target
= control target key end

     0   :  { %7 = vsyncpa [#allocation3], 0  ;;  %s1102_s0 = inlined_call_operand.hbm [shape: bf16[16,256], index: 0, kind: input, shape index: {}]   ;;  %s1103_s1 = inlined_call_operand.hbm [shape: bf16[256,256], index: 1, kind: input, shape index: {}]   ;;  %s1104_s2 = inlined_call_operand.hbm [shape: f32[16,256], index: 2, kind: output, shape index: {}]  }
   0x1   :  { %8 = vsyncpa [#allocation6], 0 }
   0x2   :  { %10 = vsyncpa [#allocation6 + $0x1], 0 }
   0x3   :  { %11 = vsyncpa [#allocation4], 0 }
   0x4   :  { %13 = vsyncpa [#allocation4 + $0x1], 0  ;;  %s860_s9 = smov 0   ;;  %s862_s10 = smov 0  }
   0x5   :  { %s864_s11 = smov 0   ;;  %s866_s12 = smov 0  }
   0x6   :  { %s868_s13 = smov 0   ;;  %s870_s14 = smov 0  }
   0x7 LB: > { %s534_s15 = sadd.s32 4294967295, %s833_s14   ;;  %s535_s16 = sadd.s32 4294967294, %s833_s14   ;;  %s833_s14 = sphi %s870_s14, %s19_s14   ;;  %s829_s13 = sphi %s868_s13, %s1130_s13   ;;  %s825_s12 = sphi %s866_s12, %s1129_s12   ;;  %s821_s11 = sphi %s864_s11, %s1128_s11   ;;  %s817_s10 = sphi %s862_s10, %s1127_s10   ;;  %s813_s9 = sphi %s860_s9, %s1126_s9  }
   0x8   : > { %p82_p0 = scmp.ne.s32.totalorder %s821_s11, %s817_s10  ;;  %p83_p1 = scmp.eq.s32.totalorder %s833_s14, 0 }
   0x9   : > { %p88_p2 = scmp.ne.s32.totalorder %s817_s10, %s813_s9  ;;  %p897_p3 = scmp.eq.s32.totalorder %s534_s15, 0 }
   0xa   : > { %p901_p4 = por %p83_p1, %p82_p0  ;;  %p114_p5 = scmp.eq.s32.totalorder %s534_s15, 1 }
   0xb   : > { %s1111_s17 = scalar_select %p897_p3, 1, 0 }
   0xc   : > { %p907_p6 = por %p897_p3, %p88_p2  ;;  %p120_p7 = scmp.eq.s32.totalorder %s535_s16, 1 }
   0xd   : > { %p911_p8 = por %p114_p5, %p82_p0  ;;  %p536_p9 = scmp.ge.s32.totalorder %s833_s14, 1 }
   0xe   : > { %s1113_s19 = scalar_select %p907_p6, 1, 0 }
   0xf   : > { %s1114_s20 = scalar_select %p911_p8, 1, 0 }
  0x10   : > { %p916_p10 = por %p120_p7, %p88_p2  ;;  %p127_p11 = scmp.lt.s32.totalorder %s833_s14, 3 }
  0x11   : > { %s835_s23 = smov [#allocation2]   ;;  %p610_p1 = scmp.lt.s32.totalorder %s833_s14, 2 }
  0x12   : > { %s1115_s21 = scalar_select %p916_p10, 1, 0 }
  0x13   : > { %p921_p12 = pnand %p536_p9, %p127_p11  ;;  %s145_s24 = sshll.u32 %s835_s23, 4  ;;  %s925_s24 = int_to_ptr.vmem [resolvable:$true] %s145_s24 }
  0x14   : > { %p939_p2 = pnand %p610_p1, %p901_p4  ;;  %s34_s27 = sadd.s32 1, %s829_s13 }
  0x15   : > { %s1116_s22 = scalar_select %p921_p12, 1, 0 }
  0x16   : > { %p597_p13 = pneg %p921_p12  ;;  %s689_s30 = scalar_lea.hbm %s1102_s0, 256 }
  0x17   : > { %s1118_s26 = scalar_select %p939_p2, 1, 0 }
  0x18   : > { %p933_p5 = pnand %p597_p13, %p897_p3  ;;  %p690_p7 = scmp.ne.s32.totalorder %s1102_s0, %s689_s30 }
  0x19   : > { %p696_p4 = scmp.lt.u32.totalorder %s689_s30, %s1102_s0 }
  0x1a   : > { %p691_p9 = pneg %p933_p5 }
  0x1c   : > { %p692_p11 = pnand %p691_p9, %p690_p7 }
  0x1e   : > { %p693_p13 = pneg %p692_p11 }
  0x20   : > { %p698_p1 = pnand %p696_p4, %p693_p13 }
  0x22   : > { %701 = shalt.err (!%p698_p1)
}
  0x23   : > { %s702_s7 = scalar_lea.vmem %s925_s24, 256  ;;  %p710_p6 = scmp.lt.s32.totalorder %s925_s24, %s925_s24 }
  0x24   : > { %p703_p0 = scmp.ne.s32.totalorder %s925_s24, %s702_s7  ;;  %p711_p3 = scmp.lt.s32.totalorder %s702_s7, %s702_s7 }
  0x26   : > { %p705_p10 = pnand %p703_p0, %p691_p9  ;;  %p712_p12 = por %p711_p3, %p710_p6 }
  0x28   : > { %p706_p8 = pneg %p705_p10 }
  0x2a   : > { %p713_p2 = pnand %p712_p12, %p706_p8 }
  0x2c   : > { %716 = shalt.err (!%p713_p2)
}
  0x2d   : > { %s836_s8 = smov 128   ;;  %s837_s15 = smov 8  }
  0x2e   : > { %600 = dma.hbm_to_vmem [thread:$0]  (!%p933_p5), %s1102_s0, 256, %s925_s24, [#allocation3], %s836_s8, %s836_s8, %s837_s15  }
  0x2f   : > { %p36_p10 = scmp.ge.s32.totalorder %s34_s27, 2  ;;  %s75_s23 = sadd.s32 1, %s821_s11 }
  0x30   : > { %s159_s28 = sand.u32 1, %s821_s11   ;;  %s540_s3 = sshll.u32 %s829_s13, 6 }
  0x31   : > { %s1132_s27 = smov (%p36_p10, %s34_s27), 0  ;;  %s539_s29 = sshll.u32 %s159_s28, 7 }
  0x32   : > { %s71_s30 = ssub.s32 %s829_s13, %s1132_s27  ;;  %s977_s5 = scalar_lea.hbm %s1103_s1, %s540_s3 }
  0x33   : > { %p73_p3 = scmp.eq.s32.totalorder %s71_s30, 0  ;;  %s163_s24 = scalar_lea.vmem [#allocation5], %s539_s29 }
  0x34   : > { %s172_s6 = sshll.u32 %s163_s24, 4  ;;  %s984_s15 = scalar_lea.sflag [#allocation6], %s159_s28  ;;  %s982_s6 = int_to_ptr.vmem [resolvable:$true] %s172_s6 }
  0x35   : > { %s980_s7 = scalar_select %p73_p3, %s821_s11, %s75_s23  }
  0x36   : > { %s717_s16 = scalar_lea.hbm %s977_s5, 2048  ;;  %p1119_p8 = scmp.ne.s32.totalorder %s1118_s26, 0 }
  0x37   : > { %p718_p6 = scmp.ne.s32.totalorder %s977_s5, %s717_s16  ;;  %s722_s3 = scalar_lea.hbm %s1103_s1, 4096 }
  0x38   : > { %p719_p12 = pneg %p1119_p8  ;;  %p723_p2 = scmp.lt.u32.totalorder %s977_s5, %s1103_s1 }
  0x39   : > { %p724_p7 = scmp.lt.u32.totalorder %s722_s3, %s717_s16  ;;  %p726_p11 = scmp.lt.u32.totalorder %s717_s16, %s977_s5 }
  0x3a   : > { %p720_p0 = pnand %p719_p12, %p718_p6 }
  0x3b   : > { %p725_p9 = por %p724_p7, %p723_p2 }
  0x3c   : > { %p721_p5 = pneg %p720_p0 }
  0x3d   : > { %p727_p13 = por %p726_p11, %p725_p9 }
  0x3f   : > { %p728_p4 = pnand %p727_p13, %p721_p5 }
  0x41   : > { %731 = shalt.err (!%p728_p4)
}
  0x42   : > { %s732_s23 = scalar_lea.vmem %s982_s6, 2048  ;;  %s838_s28 = smov [#allocation5]  }
  0x43   : > { %p733_p1 = scmp.ne.s32.totalorder %s982_s6, %s732_s23  ;;  %s737_s25 = sshll.u32 %s838_s28, 4  ;;  %s738_s25 = int_to_ptr.vmem [resolvable:$false] %s737_s25 }
  0x44   : > { %s739_s24 = scalar_lea.vmem %s738_s25, 4096  ;;  %p740_p6 = scmp.lt.s32.totalorder %s982_s6, %s738_s25 }
  0x45   : > { %p735_p10 = pnand %p733_p1, %p719_p12  ;;  %p741_p0 = scmp.lt.s32.totalorder %s739_s24, %s732_s23 }
  0x47   : > { %p736_p3 = pneg %p735_p10  ;;  %p742_p2 = por %p741_p0, %p740_p6 }
  0x49   : > { %p743_p7 = pnand %p742_p2, %p736_p3 }
  0x4b   : > { %746 = shalt.err (!%p743_p7)
}
  0x4c   : > { %s839_s16 = smov 64   ;;  %s840_s18 = smov 4  }
  0x4d   : > { %604 = dma.hbm_to_vmem [thread:$0]  (!%p1119_p8), %s977_s5, 2048, %s982_s6, %s984_s15, %s836_s8, %s839_s16, %s840_s18  }
  0x4e   : > { %p1120_p12 = scmp.ne.s32.totalorder %s1116_s22, 0 }
  0x4f   : > { %p1121_p5 = scmp.ne.s32.totalorder (!%p1120_p12), %s1111_s17, 0 }
  0x50   : > { %184 = sbr.rel (%p1120_p12) target bundleno = 358 (0x166), region = 28 }
  0x57   : > { %800 = dma.done.wait (%p1121_p5), [#allocation3], 256  }
  0x58   : > { %802 = vsyncadd (%p1121_p5), [#allocation3], 4294967040  ;;  %s1020_s30 = sand.u32 1, %s817_s10   ;;  %p1122_p8 = scmp.ne.s32.totalorder %s1113_s19, 0 }
  0x59   : > { %s543_s3 = sshll.u32 %s1020_s30, 7  ;;  %s191_s29 = scalar_lea.sflag [#allocation6], %s1020_s30 }
  0x5a   : > { %s1024_s26 = scalar_lea.vmem [#allocation5], %s543_s3 }
  0x5b   : > { %804 = dma.done.wait (%p1122_p8), %s191_s29, 2048  }
  0x5c   : > { %806 = vsyncadd (%p1122_p8), %s191_s29, 4294965248  ;;  %v670_v0 = vld [vmem:[%s1024_s26 + $0x40] sm:$0xff]   ;;  %v672_v2 = vld [vmem:[%s1024_s26 + $0x48] sm:$0xff]   ;;  %s544_s17 = sshll.u32 %s1020_s30, 4  ;;  %s564_s19 = sshll.u32 %s825_s12, 7 }
  0x5d   : > { %v671_v1 = vld [vmem:[%s1024_s26] sm:$0xff]   ;;  %567 = vmatprep.subr.bf16.mxu0 %v670_v0  ;;  %v673_v3 = vld [vmem:[%s1024_s26 + $0x8] sm:$0xff]   ;;  %v674_v4 = vld [vmem:[%s1024_s26 + $0x50] sm:$0xff]   ;;  %s214_s22 = scalar_lea.vmem [#allocation7], %s544_s17  ;;  %s1051_s15 = scalar_lea.hbm %s1104_s2, %s564_s19 }
  0x5e   : > { %568 = vmatpush3.bf16.msra.mxu0 %v671_v1  ;;  %v675_v5 = vld [vmem:[%s1024_s26 + $0x10] sm:$0xff]   ;;  %v676_v6 = vld [vmem:[%s1024_s26 + $0x58] sm:$0xff]   ;;  %v678_v8 = vld [vmem:[%s1024_s26 + $0x60] sm:$0xff]   ;;  %s429_s8 = sshll.u32 %s214_s22, 4  ;;  %s414_s4 = scalar_lea.sflag [#allocation4], %s1020_s30  ;;  %s1053_s8 = int_to_ptr.vmem [resolvable:$true] %s429_s8 }
  0x5f   : > { %569 = vmatprep.subr.bf16.mxu0 %v672_v2  ;;  %v677_v7 = vld [vmem:[%s1024_s26 + $0x18] sm:$0xff]   ;;  %v679_v9 = vld [vmem:[%s1024_s26 + $0x20] sm:$0xff]   ;;  %v680_v10 = vld [vmem:[%s1024_s26 + $0x68] sm:$0xff]   ;;  %s747_s12 = scalar_lea.vmem %s1053_s8, 256  ;;  %p1123_p11 = scmp.ne.s32.totalorder %s1114_s20, 0 }
  0x60   : > { %v688_v11 = vld [vmem:[#allocation2 + $0x4] ss:$8 sps:$4 sm:$0xff]   ;;  %v681_v12 = vld [vmem:[%s1024_s26 + $0x28] sm:$0xff]   ;;  %v686_v17 = vld [vmem:[#allocation2] ss:$8 sps:$4 sm:$0xff]   ;;  %p748_p9 = scmp.ne.s32.totalorder %s1053_s8, %s747_s12  ;;  %s841_s23 = smov [#allocation7]  }
  0x61   : > { %400 = vmatprep.mubr.bf16.mxu0 %v688_v11  ;;  %v682_v13 = vld [vmem:[%s1024_s26 + $0x70] sm:$0xff]   ;;  %v684_v15 = vld [vmem:[%s1024_s26 + $0x78] sm:$0xff]   ;;  %s751_s28 = sshll.u32 %s841_s23, 4  ;;  %s752_s28 = int_to_ptr.vmem [resolvable:$false] %s751_s28 }
  0x62   : > { %570 = vmatpush3.bf16.msra.mxu0 %v673_v3  ;;  %v683_v14 = vld [vmem:[%s1024_s26 + $0x30] sm:$0xff]   ;;  %v685_v16 = vld [vmem:[%s1024_s26 + $0x38] sm:$0xff]   ;;  %p749_p13 = pnand %p748_p9, %p1123_p11  ;;  %s753_s25 = scalar_lea.vmem %s752_s28, 512 }
  0x63   : > { %571 = vmatprep.subr.bf16.mxu0 %v674_v4  ;;  %p754_p1 = scmp.lt.s32.totalorder %s1053_s8, %s752_s28  ;;  %p755_p10 = scmp.lt.s32.totalorder %s753_s25, %s747_s12 }
  0x64   : > { %p750_p4 = pneg %p749_p13 }
  0x65   : > { %p756_p3 = por %p755_p10, %p754_p1 }
  0x66   : > { %572 = vmatpush3.bf16.msra.mxu0 %v675_v5 }
  0x67   : > { %573 = vmatprep.subr.bf16.mxu0 %v676_v6  ;;  %p757_p6 = pnand %p756_p3, %p750_p4 }
  0x6a   : > { %574 = vmatpush3.bf16.msra.mxu0 %v677_v7 }
  0x6b   : > { %575 = vmatprep.subr.bf16.mxu0 %v678_v8 }
  0x6e   : > { %576 = vmatpush3.bf16.msra.mxu0 %v679_v9 }
  0x6f   : > { %577 = vmatprep.subr.bf16.mxu0 %v680_v10 }
  0x72   : > { %578 = vmatpush3.bf16.msra.mxu0 %v681_v12 }
  0x73   : > { %579 = vmatprep.subr.bf16.mxu0 %v682_v13 }
  0x76   : > { %580 = vmatpush3.bf16.msra.mxu0 %v683_v14 }
  0x77   : > { %581 = vmatprep.subr.bf16.mxu0 %v684_v15 }
  0x7a   : > { %582 = vmatpush3.bf16.msra.mxu0 %v685_v16 }
  0x7d   : > { %401 = vmatmul.mubr.bf16.vlgmr.msra.gmra.mrb[0].mxu0 %v686_v17 }
 0x150   : > { %v583_v18 = vpop.f32.mrb[0].mxu0 }
 0x151   : > { %v584_v19 = vpop.f32.mrb[1].mxu0 }
 0x152   : > { %v585_v20 = vadd.f32 %v584_v19, %v583_v18  ;;  %v586_v21 = vpop.f32.mrb[2].mxu0 }
 0x153   : > { %v587_v22 = vpop.f32.mrb[3].mxu0 }
 0x154   : > { %v588_v23 = vadd.f32 %v587_v22, %v586_v21  ;;  %411 = vst [vmem:[%s214_s22] sm:$0xff] %v585_v20 }
 0x156   : > { %412 = vst [vmem:[%s214_s22 + $0x8] sm:$0xff] %v588_v23 }
 0x157   : > { %760 = shalt.err (!%p757_p6)
}
 0x158   : > { %s761_s24 = scalar_lea.hbm %s1051_s15, 256  ;;  %s765_s3 = scalar_lea.hbm %s1104_s2, 512 }
 0x159   : > { %p762_p0 = scmp.ne.s32.totalorder %s1051_s15, %s761_s24  ;;  %p766_p12 = scmp.lt.u32.totalorder %s1051_s15, %s1104_s2 }
 0x15a   : > { %p767_p5 = scmp.lt.u32.totalorder %s765_s3, %s761_s24  ;;  %p769_p9 = scmp.lt.u32.totalorder %s761_s24, %s1051_s15 }
 0x15b   : > { %p763_p2 = pnand %p762_p0, %p1123_p11 }
 0x15c   : > { %p768_p8 = por %p767_p5, %p766_p12 }
 0x15d   : > { %p764_p7 = pneg %p763_p2 }
 0x15e   : > { %p770_p13 = por %p769_p9, %p768_p8 }
 0x160   : > { %p771_p4 = pnand %p770_p13, %p764_p7 }
 0x162   : > { %774 = shalt.err (!%p771_p4)
}
 0x163   : > { %s842_s17 = smov 128   ;;  %s843_s19 = smov 256  }
 0x164   : > { %s844_s22 = smov 8  }
 0x165   : > { %595 = dma.vmem_to_hbm [thread:$0]  (%p1123_p11), %s1053_s8, 256, %s1051_s15, %s414_s4, %s842_s17, %s843_s19, %s844_s22  }
 0x166 PF: > { %s444_s5 = sand.u32 1, %s813_s9   ;;  %p1124_p1 = scmp.ne.s32.totalorder %s1115_s21, 0 }
 0x167   : > { %p1125_p10 = scmp.ge.s32.totalorder %s833_s14, 2  ;;  %s445_s6 = scalar_lea.sflag [#allocation4], %s444_s5 }
 0x169   : > { %p606_p3 = pnand %p1125_p10, %p1124_p1 }
 0x16b   : > { %808 = dma.done.wait (!%p606_p3), %s445_s6, 256  }
 0x16c   : > { %810 = vsyncadd (!%p606_p3), %s445_s6, 4294967040  ;;  %s19_s14 = sadd.s32 1, %s833_s14   ;;  %s1126_s9 = smov %s817_s10 }
 0x16d   : > { %p16_p6 = scmp.ge.s32.totalorder %s19_s14, 4   ;;  %s1127_s10 = smov %s821_s11 }
 0x16e   : > { %s1128_s11 = smov %s980_s7  ;;  %s1129_s12 = smov %s829_s13 }
 0x16f   : > { %s1130_s13 = smov %s1132_s27  ;;  %18 = sbr.rel (!%p16_p6) target bundleno = 7 (0x7), region = 83 }
 0x176   :  { %450 = vsyncpa [#allocation3], 1 }
 0x177   :  { %452 = vsyncpa [#allocation3 + $0x1], 1 }
 0x178   :  { %453 = vsyncpa [#allocation6], 1 }
 0x179   :  { %455 = vsyncpa [#allocation6 + $0x1], 1 }
 0x17a   :  { %456 = vsyncpa [#allocation4], 1 }
 0x17b   :  { %458 = vsyncpa [#allocation4 + $0x1], 1 }

</bundles_post_ra>
